<compile_context>
chip_gen: v7x
topology: tpu7x:2x2x1
jax: 0.10.0
libtpu: 0.0.40
codegen_flags: <defaults>
</compile_context>

<pallas_src>
import functools

import jax
import jax.numpy as jnp
from jax.experimental import pallas as pl
from jax.experimental.pallas import tpu as pltpu

_LANES = 128


def _disc_loss_kernel(src_ref, tgt_ref, src_lbl_ref, tgt_lbl_ref,
                      w_pool_ref, b_pool_ref, w_head_ref, b_head_ref,
                      o_ref, *, tile_rows, valid_rows, inv_batch):
    """One batch tile; both branches share one load of the resident weights.

       per branch:  logits = tanh(feats @ Wp + bp) @ W_head + b_head
       o_ref block: (sum of this tile's src+tgt NLLs) * (1 / B)
    """
    i = pl.program_id(0)

    # Resident weights (constant index_map) -> loaded once per grid step.
    w_pool = w_pool_ref[...]
    b_pool = b_pool_ref[...]
    w_head = w_head_ref[...]
    b_head = b_head_ref[...]

    def branch_nll_sum(feats_ref, lbl_ref):
        feats = feats_ref[...].astype(jnp.bfloat16)              # (TB, H)

        # "model" pooler head: dense + tanh. bf16 tanh halves EUP pushes on
        # v6e/v7x (v5e lowers via f32; still correct) and feeds the next MXU
        # push without a separate cast.
        acc = jnp.dot(feats, w_pool,
                      preferred_element_type=jnp.float32) + b_pool
        sent = jnp.tanh(acc.astype(jnp.bfloat16))                # (TB, H) bf16

        # Fused pooler->discriminator head: single MXU pass, lane-padded to
        # 128 classes; padded columns carry a -1e30 bias so exp() of them is
        # exactly 0 in the softmax denominator.
        logits = jnp.dot(sent, w_head,
                         preferred_element_type=jnp.float32) + b_head

        # Stable cross-entropy without materializing log-softmax:
        #   nll = lse - z[label]
        m = jnp.max(logits, axis=-1, keepdims=True)
        z = logits - m
        lse = jnp.log(jnp.sum(jnp.exp(z), axis=-1, keepdims=True))

        lbl = lbl_ref[...]                                       # (TB, 1) int32
        # NOTE: labels must lie in [0, num_langs); an out-of-range label
        # silently selects a padded (-1e30) logit instead of raising.
        lane = jax.lax.broadcasted_iota(jnp.int32, z.shape, 1)
        picked_z = jnp.sum(jnp.where(lane == lbl, z, 0.0),
                           axis=-1, keepdims=True)
        nll = lse - picked_z                                     # (TB, 1)

        # Mask padding rows of a ragged last tile.
        row = i * tile_rows + jax.lax.broadcasted_iota(jnp.int32, nll.shape, 0)
        nll = jnp.where(row < valid_rows, nll, 0.0)
        return jnp.sum(nll)

    total = (branch_nll_sum(src_ref, src_lbl_ref)
             + branch_nll_sum(tgt_ref, tgt_lbl_ref))

    # Per-tile partial sum: every grid step owns its own output block, so the
    # batch axis can be sharded across TensorCores (v7x) -- no cross-step RMW.
    o_ref[...] = jnp.full(o_ref.shape, total * inv_batch, jnp.float32)


def prepare_discriminator_params(params, num_langs):
    """One-time (per parameter update) weight prep, hoisted out of the loss:
       * fold pooler->discriminator (no nonlinearity between them) in f32,
       * lane-pad the fused head to a multiple of 128 (-1e30 pad bias),
       * cast matmul operands to bf16 (single cast, after the f32 fusion)."""
    H = params["w_pool"].shape[0]
    l_pad = max(_LANES, ((num_langs + _LANES - 1) // _LANES) * _LANES)

    w_head = params["w_mean"] @ params["w_disc"]                     # (H, L) f32
    b_head = params["b_mean"] @ params["w_disc"] + params["b_disc"]  # (1, L) f32

    w_head_p = jnp.zeros((H, l_pad), jnp.bfloat16)
    w_head_p = w_head_p.at[:, :num_langs].set(w_head.astype(jnp.bfloat16))
    b_head_p = jnp.full((1, l_pad), -1e30, jnp.float32)
    b_head_p = b_head_p.at[:, :num_langs].set(b_head)

    return {
        "w_pool": params["w_pool"].astype(jnp.bfloat16),
        "b_pool": params["b_pool"].astype(jnp.float32),
        "w_head": w_head_p,
        "b_head": b_head_p,
    }


def discriminator_loss(src_feats, tgt_feats, prepared, src_lang, tgt_lang):
    """src_feats/tgt_feats: (B, H) float pooled embeddings (cast to bf16
       in-kernel; no wrapper-side concat / cast / pad HBM round trip).
       src_lang/tgt_lang: (B,) integer language labels."""
    B, H = src_feats.shape
    l_pad = prepared["w_head"].shape[1]

    tb = B if B <= 1024 else 1024                 # batch tile rows per branch
    num_tiles = pl.cdiv(B, tb)

    src_lbl = src_lang.astype(jnp.int32).reshape(B, 1)
    tgt_lbl = tgt_lang.astype(jnp.int32).reshape(B, 1)

    kernel = functools.partial(_disc_loss_kernel, tile_rows=tb, valid_rows=B,
                               inv_batch=1.0 / B)

    out = pl.pallas_call(
        kernel,
        out_shape=jax.ShapeDtypeStruct((num_tiles, 1, _LANES), jnp.float32),
        grid=(num_tiles,),
        in_specs=[
            pl.BlockSpec((tb, H), lambda i: (i, 0)),      # src feats (pipelined)
            pl.BlockSpec((tb, H), lambda i: (i, 0)),      # tgt feats (pipelined)
            pl.BlockSpec((tb, 1), lambda i: (i, 0)),      # src labels
            pl.BlockSpec((tb, 1), lambda i: (i, 0)),      # tgt labels
            pl.BlockSpec((H, H), lambda i: (0, 0)),       # w_pool (resident)
            pl.BlockSpec((1, H), lambda i: (0, 0)),       # b_pool
            pl.BlockSpec((H, l_pad), lambda i: (0, 0)),   # fused head W (resident)
            pl.BlockSpec((1, l_pad), lambda i: (0, 0)),   # fused head b
        ],
        # Per-tile partial sums into disjoint lane-dense blocks; batch axis is
        # parallel so v7x can shard tiles across its two TensorCores.
        out_specs=pl.BlockSpec((1, 1, _LANES), lambda i: (i, 0, 0)),
        compiler_params=pltpu.CompilerParams(
            dimension_semantics=("parallel",)),
    )(src_feats, tgt_feats, src_lbl, tgt_lbl,
      prepared["w_pool"], prepared["b_pool"],
      prepared["w_head"], prepared["b_head"])

    # Each branch's CE is a mean over B rows: sum of all 2B NLLs * (1/B) was
    # applied per tile; the tiny final reduction over tiles happens here.
    return jnp.sum(out[:, 0, 0])


def make_params(key, vocab, hidden, meaning, num_langs):
    ks = jax.random.split(key, 4)
    scale = 0.02
    return {
        "emb": scale * jax.random.normal(ks[0], (vocab, hidden), jnp.float32),
        "w_pool": scale * jax.random.normal(ks[1], (hidden, hidden), jnp.float32),
        "b_pool": jnp.zeros((1, hidden), jnp.float32),
        "w_mean": scale * jax.random.normal(ks[2], (hidden, meaning), jnp.float32),
        "b_mean": jnp.zeros((1, meaning), jnp.float32),
        "w_disc": scale * jax.random.normal(ks[3], (meaning, num_langs), jnp.float32),
        "b_disc": jnp.zeros((1, num_langs), jnp.float32),
    }


def model_frontend(params, ids):
    # Simplified "model": token embedding lookup + mean pooling over sequence.
    # TODO(synk): the real injected `model` is a full transformer encoder; its
    # body is out of scope here, only its pooled-output interface is modeled.
    return jnp.mean(params["emb"][ids], axis=1)  # (B, H)


def _reference_loss(src_feats, tgt_feats, params, src_lang, tgt_lang):
    """Pure-JAX f32 reference matching the PyTorch module semantics (unfused)."""
    def branch(f, lbl):
        sent = jnp.tanh(f @ params["w_pool"] + params["b_pool"])
        meaning = sent @ params["w_mean"] + params["b_mean"]
        logits = meaning @ params["w_disc"] + params["b_disc"]
        logp = jax.nn.log_softmax(logits, axis=-1)
        nll = -jnp.take_along_axis(logp, lbl[:, None], axis=-1)
        return jnp.mean(nll)
    return branch(src_feats, src_lang) + branch(tgt_feats, tgt_lang)


if __name__ == "__main__":
    B, S, VOCAB, H, M, L = 8, 8, 64, 128, 128, 8

    key = jax.random.PRNGKey(0)
    k_ids1, k_ids2, k_l1, k_l2, k_p = jax.random.split(key, 5)

    src_ids = jax.random.randint(k_ids1, (B, S), 0, VOCAB, dtype=jnp.int32)
    tgt_ids = jax.random.randint(k_ids2, (B, S), 0, VOCAB, dtype=jnp.int32)
    # labels come in as (B, 1); the module squeezes + casts to long
    src_lang_label = jax.random.randint(k_l1, (B, 1), 0, L, dtype=jnp.int32)
    tgt_lang_label = jax.random.randint(k_l2, (B, 1), 0, L, dtype=jnp.int32)

    params = make_params(k_p, VOCAB, H, M, L)
    prepared = prepare_discriminator_params(params, L)   # hoisted weight prep

    src_language = jnp.squeeze(src_lang_label).astype(jnp.int32)
    tgt_language = jnp.squeeze(tgt_lang_label).astype(jnp.int32)

    src_feats = model_frontend(params, src_ids)
    tgt_feats = model_frontend(params, tgt_ids)

    loss = discriminator_loss(src_feats, tgt_feats, prepared,
                              src_language, tgt_language)
    jax.block_until_ready(loss)

    ref = _reference_loss(src_feats, tgt_feats, params,
                          src_language, tgt_language)
    assert loss.shape == () and bool(jnp.isfinite(loss))
    # bf16 matmul operands with f32 accumulation -> generous tolerance.
    assert jnp.allclose(loss, ref, rtol=5e-2, atol=5e-2), (loss, ref)
    print("KERNEL_OK")
</pallas_src>

<mosaic_0001>
module attributes {stable_mosaic.version = 11 : i64} {
  func.func @_disc_loss_kernel(%arg0: i32, %arg1: memref<8x128xf32, #tpu.memory_space<vmem>>, %arg2: memref<8x128xf32, #tpu.memory_space<vmem>>, %arg3: memref<8x1xi32, #tpu.memory_space<vmem>>, %arg4: memref<8x1xi32, #tpu.memory_space<vmem>>, %arg5: memref<128x128xbf16, #tpu.memory_space<vmem>>, %arg6: memref<1x128xf32, #tpu.memory_space<vmem>>, %arg7: memref<128x128xbf16, #tpu.memory_space<vmem>>, %arg8: memref<1x128xf32, #tpu.memory_space<vmem>>, %arg9: memref<1x1x128xf32, #tpu.memory_space<vmem>>) attributes {dimension_semantics = [#tpu.dimension_semantics<parallel>], iteration_bounds = array<i64: 1>, scalar_prefetch = 0 : i64, scratch_operands = 0 : i64, tpu.core_type = #tpu.core_type<tc>, window_params = [{transform_indices = @transform_0, window_bounds = array<i64: 8, 128>}, {transform_indices = @transform_1, window_bounds = array<i64: 8, 128>}, {transform_indices = @transform_2, window_bounds = array<i64: 8, 1>}, {transform_indices = @transform_3, window_bounds = array<i64: 8, 1>}, {pipeline_mode = #tpu.pipeline_mode<synchronous>, transform_indices = @transform_4, window_bounds = array<i64: 128, 128>}, {pipeline_mode = #tpu.pipeline_mode<synchronous>, transform_indices = @transform_5, window_bounds = array<i64: 1, 128>}, {pipeline_mode = #tpu.pipeline_mode<synchronous>, transform_indices = @transform_6, window_bounds = array<i64: 128, 128>}, {pipeline_mode = #tpu.pipeline_mode<synchronous>, transform_indices = @transform_7, window_bounds = array<i64: 1, 128>}, {transform_indices = @transform_8, window_bounds = array<i64: 1, 1, 128>}]} {
    %c0 = arith.constant 0 : index
    %c0_0 = arith.constant 0 : index
    %0 = vector.load %arg5[%c0, %c0_0] : memref<128x128xbf16, #tpu.memory_space<vmem>>, vector<128x128xbf16>
    %c0_1 = arith.constant 0 : index
    %c0_2 = arith.constant 0 : index
    %1 = vector.load %arg6[%c0_1, %c0_2] : memref<1x128xf32, #tpu.memory_space<vmem>>, vector<1x128xf32>
    %c0_3 = arith.constant 0 : index
    %c0_4 = arith.constant 0 : index
    %2 = vector.load %arg7[%c0_3, %c0_4] : memref<128x128xbf16, #tpu.memory_space<vmem>>, vector<128x128xbf16>
    %c0_5 = arith.constant 0 : index
    %c0_6 = arith.constant 0 : index
    %3 = vector.load %arg8[%c0_5, %c0_6] : memref<1x128xf32, #tpu.memory_space<vmem>>, vector<1x128xf32>
    %c0_7 = arith.constant 0 : index
    %c0_8 = arith.constant 0 : index
    %4 = vector.load %arg1[%c0_7, %c0_8] : memref<8x128xf32, #tpu.memory_space<vmem>>, vector<8x128xf32>
    %5 = arith.truncf %4 : vector<8x128xf32> to vector<8x128xbf16>
    %cst = arith.constant dense<0.000000e+00> : vector<8x128xf32>
    %6 = tpu.matmul %5, %0, %cst {dimension_numbers = #tpu.dot_dimension_numbers<[1], [0], [0], [1], [0, 0, 1, 1], [], []>} : vector<8x128xbf16>, vector<128x128xbf16>, vector<8x128xf32> -> vector<8x128xf32>
    %7 = vector.broadcast %1 : vector<1x128xf32> to vector<8x128xf32>
    %8 = arith.addf %6, %7 : vector<8x128xf32>
    %9 = arith.truncf %8 : vector<8x128xf32> to vector<8x128xbf16>
    %10 = math.tanh %9 : vector<8x128xbf16>
    %cst_9 = arith.constant dense<0.000000e+00> : vector<8x128xf32>
    %11 = tpu.matmul %10, %2, %cst_9 {dimension_numbers = #tpu.dot_dimension_numbers<[1], [0], [0], [1], [0, 0, 1, 1], [], []>} : vector<8x128xbf16>, vector<128x128xbf16>, vector<8x128xf32> -> vector<8x128xf32>
    %12 = vector.broadcast %3 : vector<1x128xf32> to vector<8x128xf32>
    %13 = arith.addf %11, %12 : vector<8x128xf32>
    %cst_10 = arith.constant dense<0xFF800000> : vector<8xf32>
    %14 = vector.multi_reduction <maximumf>, %13, %cst_10 [1] : vector<8x128xf32> to vector<8xf32>
    %15 = vector.shape_cast %14 : vector<8xf32> to vector<8x1xf32>
    %16 = vector.broadcast %15 : vector<8x1xf32> to vector<8x128xf32>
    %17 = arith.subf %13, %16 : vector<8x128xf32>
    %18 = math.exp %17 : vector<8x128xf32>
    %cst_11 = arith.constant dense<0.000000e+00> : vector<8xf32>
    %19 = vector.multi_reduction <add>, %18, %cst_11 [1] : vector<8x128xf32> to vector<8xf32>
    %20 = vector.shape_cast %19 : vector<8xf32> to vector<8x1xf32>
    %21 = math.log %20 : vector<8x1xf32>
    %c0_12 = arith.constant 0 : index
    %c0_13 = arith.constant 0 : index
    %22 = vector.load %arg3[%c0_12, %c0_13] : memref<8x1xi32, #tpu.memory_space<vmem>>, vector<8x1xi32>
    %23 = tpu.iota {dimensions = array<i32: 1>} : vector<8x128xi32>
    %24 = vector.broadcast %22 : vector<8x1xi32> to vector<8x128xi32>
    %25 = arith.cmpi eq, %23, %24 : vector<8x128xi32>
    %cst_14 = arith.constant 0.000000e+00 : f32
    %26 = vector.broadcast %cst_14 : f32 to vector<8x128xf32>
    %27 = arith.select %25, %17, %26 : vector<8x128xi1>, vector<8x128xf32>
    %cst_15 = arith.constant dense<0.000000e+00> : vector<8xf32>
    %28 = vector.multi_reduction <add>, %27, %cst_15 [1] : vector<8x128xf32> to vector<8xf32>
    %29 = vector.shape_cast %28 : vector<8xf32> to vector<8x1xf32>
    %30 = arith.subf %21, %29 : vector<8x1xf32>
    %c8_i32 = arith.constant 8 : i32
    %31 = arith.muli %arg0, %c8_i32 : i32
    %32 = tpu.iota {dimensions = array<i32: 0>} : vector<8x1xi32>
    %33 = vector.broadcast %31 : i32 to vector<8x1xi32>
    %34 = arith.addi %33, %32 : vector<8x1xi32>
    %c8_i32_16 = arith.constant 8 : i32
    %35 = vector.broadcast %c8_i32_16 : i32 to vector<8x1xi32>
    %36 = arith.cmpi slt, %34, %35 : vector<8x1xi32>
    %cst_17 = arith.constant 0.000000e+00 : f32
    %37 = vector.broadcast %cst_17 : f32 to vector<8x1xf32>
    %38 = arith.select %36, %30, %37 : vector<8x1xi1>, vector<8x1xf32>
    %39 = vector.shape_cast %38 : vector<8x1xf32> to vector<1x8x1xf32>
    %cst_18 = arith.constant dense<0.000000e+00> : vector<1xf32>
    %40 = vector.multi_reduction <add>, %39, %cst_18 [1, 2] : vector<1x8x1xf32> to vector<1xf32>
    %41 = vector.shape_cast %40 : vector<1xf32> to vector<1x1x1xf32>
    %42 = vector.extract %41[0, 0, 0] : f32 from vector<1x1x1xf32>
    %c0_19 = arith.constant 0 : index
    %c0_20 = arith.constant 0 : index
    %43 = vector.load %arg2[%c0_19, %c0_20] : memref<8x128xf32, #tpu.memory_space<vmem>>, vector<8x128xf32>
    %44 = arith.truncf %43 : vector<8x128xf32> to vector<8x128xbf16>
    %cst_21 = arith.constant dense<0.000000e+00> : vector<8x128xf32>
    %45 = tpu.matmul %44, %0, %cst_21 {dimension_numbers = #tpu.dot_dimension_numbers<[1], [0], [0], [1], [0, 0, 1, 1], [], []>} : vector<8x128xbf16>, vector<128x128xbf16>, vector<8x128xf32> -> vector<8x128xf32>
    %46 = vector.broadcast %1 : vector<1x128xf32> to vector<8x128xf32>
    %47 = arith.addf %45, %46 : vector<8x128xf32>
    %48 = arith.truncf %47 : vector<8x128xf32> to vector<8x128xbf16>
    %49 = math.tanh %48 : vector<8x128xbf16>
    %cst_22 = arith.constant dense<0.000000e+00> : vector<8x128xf32>
    %50 = tpu.matmul %49, %2, %cst_22 {dimension_numbers = #tpu.dot_dimension_numbers<[1], [0], [0], [1], [0, 0, 1, 1], [], []>} : vector<8x128xbf16>, vector<128x128xbf16>, vector<8x128xf32> -> vector<8x128xf32>
    %51 = vector.broadcast %3 : vector<1x128xf32> to vector<8x128xf32>
    %52 = arith.addf %50, %51 : vector<8x128xf32>
    %cst_23 = arith.constant dense<0xFF800000> : vector<8xf32>
    %53 = vector.multi_reduction <maximumf>, %52, %cst_23 [1] : vector<8x128xf32> to vector<8xf32>
    %54 = vector.shape_cast %53 : vector<8xf32> to vector<8x1xf32>
    %55 = vector.broadcast %54 : vector<8x1xf32> to vector<8x128xf32>
    %56 = arith.subf %52, %55 : vector<8x128xf32>
    %57 = math.exp %56 : vector<8x128xf32>
    %cst_24 = arith.constant dense<0.000000e+00> : vector<8xf32>
    %58 = vector.multi_reduction <add>, %57, %cst_24 [1] : vector<8x128xf32> to vector<8xf32>
    %59 = vector.shape_cast %58 : vector<8xf32> to vector<8x1xf32>
    %60 = math.log %59 : vector<8x1xf32>
    %c0_25 = arith.constant 0 : index
    %c0_26 = arith.constant 0 : index
    %61 = vector.load %arg4[%c0_25, %c0_26] : memref<8x1xi32, #tpu.memory_space<vmem>>, vector<8x1xi32>
    %62 = tpu.iota {dimensions = array<i32: 1>} : vector<8x128xi32>
    %63 = vector.broadcast %61 : vector<8x1xi32> to vector<8x128xi32>
    %64 = arith.cmpi eq, %62, %63 : vector<8x128xi32>
    %cst_27 = arith.constant 0.000000e+00 : f32
    %65 = vector.broadcast %cst_27 : f32 to vector<8x128xf32>
    %66 = arith.select %64, %56, %65 : vector<8x128xi1>, vector<8x128xf32>
    %cst_28 = arith.constant dense<0.000000e+00> : vector<8xf32>
    %67 = vector.multi_reduction <add>, %66, %cst_28 [1] : vector<8x128xf32> to vector<8xf32>
    %68 = vector.shape_cast %67 : vector<8xf32> to vector<8x1xf32>
    %69 = arith.subf %60, %68 : vector<8x1xf32>
    %c8_i32_29 = arith.constant 8 : i32
    %70 = arith.muli %arg0, %c8_i32_29 : i32
    %71 = tpu.iota {dimensions = array<i32: 0>} : vector<8x1xi32>
    %72 = vector.broadcast %70 : i32 to vector<8x1xi32>
    %73 = arith.addi %72, %71 : vector<8x1xi32>
    %c8_i32_30 = arith.constant 8 : i32
    %74 = vector.broadcast %c8_i32_30 : i32 to vector<8x1xi32>
    %75 = arith.cmpi slt, %73, %74 : vector<8x1xi32>
    %cst_31 = arith.constant 0.000000e+00 : f32
    %76 = vector.broadcast %cst_31 : f32 to vector<8x1xf32>
    %77 = arith.select %75, %69, %76 : vector<8x1xi1>, vector<8x1xf32>
    %78 = vector.shape_cast %77 : vector<8x1xf32> to vector<1x8x1xf32>
    %cst_32 = arith.constant dense<0.000000e+00> : vector<1xf32>
    %79 = vector.multi_reduction <add>, %78, %cst_32 [1, 2] : vector<1x8x1xf32> to vector<1xf32>
    %80 = vector.shape_cast %79 : vector<1xf32> to vector<1x1x1xf32>
    %81 = vector.extract %80[0, 0, 0] : f32 from vector<1x1x1xf32>
    %82 = arith.addf %42, %81 : f32
    %cst_33 = arith.constant 1.250000e-01 : f32
    %83 = arith.mulf %82, %cst_33 : f32
    %84 = vector.broadcast %83 : f32 to vector<1x1x128xf32>
    %c0_34 = arith.constant 0 : index
    %c0_35 = arith.constant 0 : index
    %c0_36 = arith.constant 0 : index
    %85 = vector.load %arg9[%c0_34, %c0_35, %c0_36] : memref<1x1x128xf32, #tpu.memory_space<vmem>>, vector<1x1x128xf32>
    tpu.vector_store %arg9[%c0_34, %c0_35, %c0_36], %84 {strides = array<i32>} : memref<1x1x128xf32, #tpu.memory_space<vmem>>, vector<1x1x128xf32>,
    return
  }
  func.func @transform_0(%arg0: i32) -> (i32, i32) {
    %c0_i32 = arith.constant 0 : i32
    %c0_i32_0 = arith.constant 0 : i32
    return %arg0, %c0_i32 : i32, i32
  }
  func.func @transform_1(%arg0: i32) -> (i32, i32) {
    %c0_i32 = arith.constant 0 : i32
    %c0_i32_0 = arith.constant 0 : i32
    return %arg0, %c0_i32 : i32, i32
  }
  func.func @transform_2(%arg0: i32) -> (i32, i32) {
    %c0_i32 = arith.constant 0 : i32
    %c0_i32_0 = arith.constant 0 : i32
    return %arg0, %c0_i32 : i32, i32
  }
  func.func @transform_3(%arg0: i32) -> (i32, i32) {
    %c0_i32 = arith.constant 0 : i32
    %c0_i32_0 = arith.constant 0 : i32
    return %arg0, %c0_i32 : i32, i32
  }
  func.func @transform_4(%arg0: i32) -> (i32, i32) {
    %c0_i32 = arith.constant 0 : i32
    %c0_i32_0 = arith.constant 0 : i32
    %c0_i32_1 = arith.constant 0 : i32
    return %c0_i32, %c0_i32_0 : i32, i32
  }
  func.func @transform_5(%arg0: i32) -> (i32, i32) {
    %c0_i32 = arith.constant 0 : i32
    %c0_i32_0 = arith.constant 0 : i32
    %c0_i32_1 = arith.constant 0 : i32
    return %c0_i32, %c0_i32_0 : i32, i32
  }
  func.func @transform_6(%arg0: i32) -> (i32, i32) {
    %c0_i32 = arith.constant 0 : i32
    %c0_i32_0 = arith.constant 0 : i32
    %c0_i32_1 = arith.constant 0 : i32
    return %c0_i32, %c0_i32_0 : i32, i32
  }
  func.func @transform_7(%arg0: i32) -> (i32, i32) {
    %c0_i32 = arith.constant 0 : i32
    %c0_i32_0 = arith.constant 0 : i32
    %c0_i32_1 = arith.constant 0 : i32
    return %c0_i32, %c0_i32_0 : i32, i32
  }
  func.func @transform_8(%arg0: i32) -> (i32, i32, i32) {
    %c0_i32 = arith.constant 0 : i32
    %c0_i32_0 = arith.constant 0 : i32
    %c0_i32_1 = arith.constant 0 : i32
    return %arg0, %c0_i32, %c0_i32_0 : i32, i32, i32
  }
}

</mosaic_0001>

<bundles_post_ra>
// kernel: tpu_custom_call.1
= control target key start
LH: loop header
LB: loop body
LE: loop exit
PB: predicated region body
PF: predicated region fallthrough
CT: control target
= control target key end

     0   :  { %13 = vsyncpa [#allocation3], 0  ;;  %s863_s0 = inlined_call_operand.vmem [shape: f32[8,128], index: 0, kind: input, shape index: {}]   ;;  %s864_s1 = inlined_call_operand.vmem [shape: f32[8,128], index: 1, kind: input, shape index: {}]   ;;  %s865_s2 = inlined_call_operand.vmem [shape: s32[8,1], index: 2, kind: input, shape index: {}]   ;;  %s866_s3 = inlined_call_operand.vmem [shape: s32[8,1], index: 3, kind: input, shape index: {}]   ;;  %s867_s4 = inlined_call_operand.hbm [shape: bf16[128,128], index: 4, kind: input, shape index: {}]   ;;  %s868_s5 = inlined_call_operand.vmem [shape: f32[1,128], index: 5, kind: input, shape index: {}]   ;;  %s869_s6 = inlined_call_operand.hbm [shape: bf16[128,128], index: 6, kind: input, shape index: {}]   ;;  %s870_s7 = inlined_call_operand.vmem [shape: f32[1,128], index: 7, kind: input, shape index: {}]   ;;  %s871_s8 = inlined_call_operand.hbm [shape: f32[1,1,128], index: 8, kind: output, shape index: {}]  }
   0x1   :  { %14 = vsyncpa [#allocation6], 0 }
   0x2   :  { %15 = vsyncpa [#allocation4], 0  ;;  %s704_s27 = smov [#allocation2]   ;;  %s632_s9 = scalar_lea.hbm %s867_s4, 1024 }
   0x3   :  { %s29_s28 = sshll.u32 %s704_s27, 4  ;;  %p633_p0 = scmp.ne.s32.totalorder %s867_s4, %s632_s9  ;;  %s30_s28 = int_to_ptr.vmem [resolvable:$true] %s29_s28 }
   0x4   :  { %p636_p1 = scmp.lt.u32.totalorder %s632_s9, %s867_s4 }
   0x6   :  { %p638_p2 = pnand %p636_p1, %p633_p0 }
   0x8   :  { %641 = shalt.err (!%p638_p2)
}
   0x9   :  { %s642_s14 = scalar_lea.vmem %s30_s28, 1024  ;;  %p647_p4 = scmp.lt.s32.totalorder %s30_s28, %s30_s28 }
   0xa   :  { %p643_p3 = scmp.ne.s32.totalorder %s30_s28, %s642_s14  ;;  %p648_p5 = scmp.lt.s32.totalorder %s642_s14, %s642_s14 }
   0xc   :  { %p649_p6 = por %p648_p5, %p647_p4 }
   0xe   :  { %p650_p7 = pnand %p649_p6, %p643_p3 }
  0x10   :  { %653 = shalt.err (!%p650_p7)
}
  0x11   :  { %s705_s15 = smov 64   ;;  %s706_s16 = smov 4  }
  0x12   :  { %35 = dma.hbm_to_vmem [thread:$0]  %s867_s4, 1024, %s30_s28, [#allocation3], %s705_s15, %s705_s15, %s706_s16  }
  0x13   :  { %s707_s19 = smov [#allocation5]   ;;  %s654_s23 = scalar_lea.hbm %s869_s6, 1024 }
  0x14   :  { %s43_s20 = sshll.u32 %s707_s19, 4  ;;  %p655_p8 = scmp.ne.s32.totalorder %s869_s6, %s654_s23  ;;  %s44_s20 = int_to_ptr.vmem [resolvable:$true] %s43_s20 }
  0x15   :  { %p658_p9 = scmp.lt.u32.totalorder %s654_s23, %s869_s6 }
  0x17   :  { %p660_p10 = pnand %p658_p9, %p655_p8 }
  0x19   :  { %663 = shalt.err (!%p660_p10)
}
  0x1a   :  { %s664_s29 = scalar_lea.vmem %s44_s20, 1024  ;;  %p669_p12 = scmp.lt.s32.totalorder %s44_s20, %s44_s20 }
  0x1b   :  { %p665_p11 = scmp.ne.s32.totalorder %s44_s20, %s664_s29  ;;  %p670_p13 = scmp.lt.s32.totalorder %s664_s29, %s664_s29 }
  0x1d   :  { %p671_p0 = por %p670_p13, %p669_p12 }
  0x1f   :  { %p672_p1 = pnand %p671_p0, %p665_p11 }
  0x21   :  { %675 = shalt.err (!%p672_p1)
}
  0x22   :  { %49 = dma.hbm_to_vmem [thread:$0]  %s869_s6, 1024, %s44_s20, [#allocation6], %s705_s15, %s705_s15, %s706_s16  }
  0x23   :  { %698 = dma.done.wait [#allocation3], 1024  }
  0x24   :  { %699 = vsyncadd [#allocation3], 4294966272 }
  0x25   :  { %700 = dma.done.wait [#allocation6], 1024  }
  0x26   :  { %701 = vsyncadd [#allocation6], 4294966272  ;;  %v708_v0 = vmov 0.0   ;;  %vm709_vm0 = vmmov 0   ;;  %v604_v1 = vld [vmem:[#allocation2] sm:$0xff]   ;;  %v605_v2 = vld [vmem:[#allocation2 + $0x8] sm:$0xff]   ;;  %v295_v53 = vlaneseq }
  0x27   :  { %510 = vmatprep.subr.bf16.mxu0 %v708_v0  ;;  %526 = vmatprep.mubr.msk.bf16.mxu0 %vm709_vm0, %v708_v0  ;;  %v606_v3 = vld [vmem:[#allocation2 + $0x10] sm:$0xff]   ;;  %v789_v4 = vld [vmem:[#allocation5] sm:$0xff]   ;;  %v607_v5 = vld [vmem:[#allocation2 + $0x18] sm:$0xff]   ;;  %v710_v37 = vmov 0   ;;  %vm312_vm3 = vcmask 7168   ;;  %s711_s16 = smov [#allocation7]  }
  0x28   :  { %530 = vmatprep.subr.bf16.mxu1 %v708_v0  ;;  %546 = vmatprep.mubr.msk.bf16.mxu1 %vm709_vm0, %v708_v0  ;;  %v793_v6 = vld [vmem:[#allocation5 + $0x8] sm:$0xff]   ;;  %v608_v7 = vld [vmem:[#allocation2 + $0x20] sm:$0xff]   ;;  %v798_v8 = vld [vmem:[#allocation5 + $0x10] sm:$0xff]   ;;  %v296_v54 = vand.u32 127, %v295_v53  ;;  %s446_s17 = sshll.u32 %s711_s16, 4  ;;  %s447_s17 = int_to_ptr.vmem [resolvable:$true] %s446_s17 }
  0x29   :  { %511 = vmatpush3.bf16.msra.mxu0 %v604_v1  ;;  %531 = vmatpush3.bf16.msra.mxu1 %v789_v4  ;;  %v609_v9 = vld [vmem:[#allocation2 + $0x28] sm:$0xff]   ;;  %v615_v10 = vld [vmem:[#allocation5 + $0x18] sm:$0xff]   ;;  %v610_v11 = vld [vmem:[#allocation2 + $0x30] sm:$0xff]   ;;  %s676_s19 = scalar_lea.vmem %s447_s17, 16  ;;  %s680_s20 = scalar_lea.vmem %s447_s17, 32 }
  0x2a   :  { %512 = vmatprep.subr.bf16.mxu0 %v708_v0  ;;  %532 = vmatprep.subr.bf16.mxu1 %v708_v0  ;;  %v611_v12 = vld [vmem:[#allocation2 + $0x38] sm:$0xff]   ;;  %v93_v13 = vld [vmem:[%s863_s0] sm:$0xff]  ;;  %v617_v18 = vld [vmem:[#allocation5 + $0x28] sm:$0xff]   ;;  %p677_p2 = scmp.ne.s32.totalorder %s447_s17, %s676_s19  ;;  %p681_p3 = scmp.lt.s32.totalorder %s447_s17, %s447_s17 }
  0x2b   :  { %v94_v14 = vpack.c.bf16 %v93_v13, %v93_v13  ;;  %v323_v15 = vld [vmem:[%s864_s1] sm:$0xff]  ;;  %v618_v19 = vld [vmem:[#allocation5 + $0x30] sm:$0xff]   ;;  %v619_v20 = vld [vmem:[#allocation5 + $0x38] sm:$0xff]   ;;  %602 = vset.pattern.permute.xlu1 %v710_v37  ;;  %603 = vset.pattern.permute.xlu0 %v710_v37  ;;  %p682_p4 = scmp.lt.s32.totalorder %s680_s20, %s676_s19 }
  0x2c   :  { %v324_v16 = vpack.c.bf16 %v323_v15, %v323_v15  ;;  %v616_v17 = vld [vmem:[#allocation5 + $0x20] sm:$0xff]  }
  0x2d   :  { %513 = vmatpush3.bf16.msra.mxu0 %v605_v2  ;;  %533 = vmatpush3.bf16.msra.mxu1 %v793_v6  ;;  %v456_v21 = vld [vmem:[%s868_s5] ss:$0 sm:$0xff]  ;;  %p683_p5 = por %p682_p4, %p681_p3 }
  0x2e   :  { %514 = vmatprep.subr.bf16.mxu0 %v708_v0  ;;  %534 = vmatprep.subr.bf16.mxu1 %v708_v0  ;;  %v294_v36 = vld [vmem:[%s865_s2] sm:$0xff] }
  0x2f   :  { %298 = vperm.xlu1 %602, %v294_v36   ;;  %v416_v38 = vld [vmem:[%s866_s3] sm:$0xff]  ;;  %p684_p6 = pnand %p683_p5, %p677_p2 }
  0x30   :  { %v465_v39 = vld [vmem:[%s870_s7] ss:$0 sm:$0xff] }
  0x31   :  { %515 = vmatpush3.bf16.msra.mxu0 %v606_v3  ;;  %535 = vmatpush3.bf16.msra.mxu1 %v798_v8 }
  0x32   :  { %516 = vmatprep.subr.bf16.mxu0 %v708_v0  ;;  %536 = vmatprep.subr.bf16.mxu1 %v708_v0 }
  0x33   :  { %418 = vperm.xlu1 %602, %v416_v38  }
  0x35   :  { %517 = vmatpush3.bf16.msra.mxu0 %v607_v5  ;;  %537 = vmatpush3.bf16.msra.mxu1 %v615_v10 }
  0x36   :  { %518 = vmatprep.subr.bf16.mxu0 %v708_v0  ;;  %538 = vmatprep.subr.bf16.mxu1 %v708_v0 }
  0x39   :  { %519 = vmatpush3.bf16.msra.mxu0 %v608_v7  ;;  %539 = vmatpush3.bf16.msra.mxu1 %v616_v17 }
  0x3a   :  { %520 = vmatprep.subr.bf16.mxu0 %v708_v0  ;;  %540 = vmatprep.subr.bf16.mxu1 %v708_v0 }
  0x3d   :  { %521 = vmatpush3.bf16.msra.mxu0 %v609_v9  ;;  %541 = vmatpush3.bf16.msra.mxu1 %v617_v18 }
  0x3e   :  { %522 = vmatprep.subr.bf16.mxu0 %v708_v0  ;;  %542 = vmatprep.subr.bf16.mxu1 %v708_v0 }
  0x41   :  { %523 = vmatpush3.bf16.msra.mxu0 %v610_v11  ;;  %543 = vmatpush3.bf16.msra.mxu1 %v618_v19 }
  0x42   :  { %524 = vmatprep.subr.bf16.mxu0 %v708_v0  ;;  %544 = vmatprep.subr.bf16.mxu1 %v708_v0 }
  0x45   :  { %525 = vmatpush3.bf16.msra.mxu0 %v611_v12  ;;  %545 = vmatpush3.bf16.msra.mxu1 %v619_v20 }
  0x46   :  { %550 = vmatprep.subr.bf16.mxu0 %v708_v0  ;;  %570 = vmatprep.subr.bf16.mxu1 %v708_v0 }
  0x48   :  { %527 = vmatmul.mubr.bf16.vlgmr.msra.gmra.mrb[0].mxu0 %v94_v14 }
  0x49   :  { %551 = vmatpush3.bf16.msra.mxu0 %v604_v1  ;;  %566 = vmatprep.mubr.msk.bf16.mxu0 %vm709_vm0, %v708_v0 }
  0x4a   :  { %552 = vmatprep.subr.bf16.mxu0 %v708_v0 }
  0x4d   :  { %553 = vmatpush3.bf16.msra.mxu0 %v605_v2 }
  0x4e   :  { %554 = vmatprep.subr.bf16.mxu0 %v708_v0 }
  0x51   :  { %555 = vmatpush3.bf16.msra.mxu0 %v606_v3 }
  0x52   :  { %556 = vmatprep.subr.bf16.mxu0 %v708_v0 }
  0x55   :  { %557 = vmatpush3.bf16.msra.mxu0 %v607_v5 }
  0x56   :  { %558 = vmatprep.subr.bf16.mxu0 %v708_v0 }
  0x59   :  { %559 = vmatpush3.bf16.msra.mxu0 %v608_v7 }
  0x5a   :  { %560 = vmatprep.subr.bf16.mxu0 %v708_v0 }
  0x5d   :  { %561 = vmatpush3.bf16.msra.mxu0 %v609_v9 }
  0x5e   :  { %562 = vmatprep.subr.bf16.mxu0 %v708_v0 }
  0x61   :  { %563 = vmatpush3.bf16.msra.mxu0 %v610_v11 }
  0x62   :  { %564 = vmatprep.subr.bf16.mxu0 %v708_v0 }
  0x65   :  { %565 = vmatpush3.bf16.msra.mxu0 %v611_v12 }
  0x68   :  { %567 = vmatmul.mubr.bf16.vlgmr.msra.gmra.mrb[4].mxu0 %v324_v16 }
  0xae   :  { %v299_v55 = vpop.permute.xlu1 %298 }
  0xaf   :  { %vm300_vm1 = vcmp.eq.s32.totalorder %v296_v54, %v299_v55 }
  0xb2   :  { %v419_v58 = vpop.permute.xlu1 %418 }
  0xb3   :  { %vm420_vm2 = vcmp.eq.s32.totalorder %v296_v54, %v419_v58 }
 0x11b   :  { %v183_v22 = vpop.f32.mrb[0].mxu0 }
 0x11c   :  { %v184_v23 = vadd.f32 %v456_v21, %v183_v22  ;;  %v528_v24 = vpop.f32.mrb[1].mxu0 }
 0x11d   :  { %v186_v25 = vpop.f32.mrb[2].mxu0 }
 0x11e   :  { %v189_v26 = vpack.c.bf16 %v184_v23, %v184_v23  ;;  %v529_v27 = vpop.f32.mrb[3].mxu0 }
 0x120   :  { %620 = vtanh.bf16 %v189_v26 }
 0x12b   :  { %v621_v28 = vpop.eup %620 }
 0x12c   :  { %547 = vmatmul.mubr.bf16.vlgmr.msra.gmra.mrb[0].mxu1 %v621_v28 }
 0x12d   :  { %571 = vmatpush3.bf16.msra.mxu1 %v789_v4  ;;  %586 = vmatprep.mubr.msk.bf16.mxu1 %vm709_vm0, %v708_v0 }
 0x12e   :  { %572 = vmatprep.subr.bf16.mxu1 %v708_v0 }
 0x131   :  { %573 = vmatpush3.bf16.msra.mxu1 %v793_v6 }
 0x132   :  { %574 = vmatprep.subr.bf16.mxu1 %v708_v0 }
 0x135   :  { %575 = vmatpush3.bf16.msra.mxu1 %v798_v8 }
 0x136   :  { %576 = vmatprep.subr.bf16.mxu1 %v708_v0 }
 0x139   :  { %577 = vmatpush3.bf16.msra.mxu1 %v615_v10 }
 0x13a   :  { %578 = vmatprep.subr.bf16.mxu1 %v708_v0 }
 0x13b   :  { %v359_v29 = vpop.f32.mrb[4].mxu0 }
 0x13c   :  { %v360_v30 = vadd.f32 %v456_v21, %v359_v29  ;;  %v568_v31 = vpop.f32.mrb[5].mxu0 }
 0x13d   :  { %v362_v32 = vpop.f32.mrb[6].mxu0  ;;  %579 = vmatpush3.bf16.msra.mxu1 %v616_v17 }
 0x13e   :  { %v365_v33 = vpack.c.bf16 %v360_v30, %v360_v30  ;;  %v569_v34 = vpop.f32.mrb[7].mxu0  ;;  %580 = vmatprep.subr.bf16.mxu1 %v708_v0 }
 0x140   :  { %622 = vtanh.bf16 %v365_v33 }
 0x141   :  { %581 = vmatpush3.bf16.msra.mxu1 %v617_v18 }
 0x142   :  { %582 = vmatprep.subr.bf16.mxu1 %v708_v0 }
 0x145   :  { %583 = vmatpush3.bf16.msra.mxu1 %v618_v19 }
 0x146   :  { %584 = vmatprep.subr.bf16.mxu1 %v708_v0 }
 0x149   :  { %585 = vmatpush3.bf16.msra.mxu1 %v619_v20 }
 0x14b   :  { %v623_v35 = vpop.eup %622 }
 0x14c   :  { %587 = vmatmul.mubr.bf16.vlgmr.msra.gmra.mrb[4].mxu1 %v623_v35 }
 0x1ff   :  { %v279_v40 = vpop.f32.mrb[0].mxu1 }
 0x200   :  { %v280_v41 = vadd.f32 %v465_v39, %v279_v40  ;;  %v548_v42 = vpop.f32.mrb[1].mxu1 }
 0x201   :  { %v282_v43 = vpop.f32.mrb[2].mxu1 }
 0x202   :  { %285 = vmax.xlane.f32.xlu0 %v280_v41  ;;  %v549_v44 = vpop.f32.mrb[3].mxu1 }
 0x21f   :  { %v401_v45 = vpop.f32.mrb[4].mxu1 }
 0x220   :  { %v402_v46 = vadd.f32 %v465_v39, %v401_v45  ;;  %v588_v47 = vpop.f32.mrb[5].mxu1 }
 0x221   :  { %v404_v48 = vpop.f32.mrb[6].mxu1 }
 0x222   :  { %407 = vmax.xlane.f32.xlu0 %v402_v46  ;;  %v589_v49 = vpop.f32.mrb[7].mxu1 }
 0x28f   :  { %v286_v50 = vpop.xlane.xlu0 %285 }
 0x290   :  { %v287_v51 = vsub.f32 %v280_v41, %v286_v50 }
 0x292   :  { %v288_v52 = vmul.f32 1.442695, %v287_v51  ;;  %v301_v57 = vsel %vm300_vm1, %v287_v51, 0.0 }
 0x294   :  { %624 = vpow2.f32 %v288_v52 }
 0x29e   :  { %v625_v56 = vpop.eup %624 }
 0x29f   :  { %290 = vadd.xlane.f32.xlu0 %v625_v56 }
 0x2a3   :  { %302 = vadd.xlane.f32.xlu0 %v301_v57 }
 0x2af   :  { %v408_v59 = vpop.xlane.xlu0 %407 }
 0x2b0   :  { %v409_v60 = vsub.f32 %v402_v46, %v408_v59 }
 0x2b2   :  { %v410_v61 = vmul.f32 1.442695, %v409_v60  ;;  %v421_v62 = vsel %vm420_vm2, %v409_v60, 0.0 }
 0x2b3   :  { %422 = vadd.xlane.f32.xlu0 %v421_v62 }
 0x2b4   :  { %626 = vpow2.f32 %v410_v61 }
 0x2be   :  { %v627_v63 = vpop.eup %626 }
 0x2bf   :  { %412 = vadd.xlane.f32.xlu1 %v627_v63 }
 0x32c   :  { %v291_v0 = vpop.xlane.xlu0 %290 }
 0x32d   :  { %628 = vlog2.f32 %v291_v0 }
 0x330   :  { %v303_v3 = vpop.xlane.xlu0 %302 }
 0x337   :  { %v629_v1 = vpop.eup %628 }
 0x338   :  { %v293_v2 = vmul.f32 0.6931472, %v629_v1 }
 0x33a   :  { %v304_v4 = vsub.f32 %v293_v2, %v303_v3 }
 0x33c   :  { %v313_v5 = vsel %vm312_vm3, %v304_v4, 0.0 }
 0x33d   :  { %314 = vadd.xlane.f32.xlu0 %v313_v5 }
 0x340   :  { %v423_v9 = vpop.xlane.xlu0 %422 }
 0x34c   :  { %v413_v6 = vpop.xlane.xlu1 %412 }
 0x34d   :  { %630 = vlog2.f32 %v413_v6 }
 0x357   :  { %v631_v7 = vpop.eup %630 }
 0x358   :  { %v415_v8 = vmul.f32 0.6931472, %v631_v7 }
 0x35a   :  { %v424_v10 = vsub.f32 %v415_v8, %v423_v9 }
 0x35c   :  { %v426_v11 = vsel %vm312_vm3, %v424_v10, 0.0 }
 0x35d   :  { %427 = vadd.xlane.f32.xlu0 %v426_v11 }
 0x3ca   :  { %v315_v12 = vpop.xlane.xlu0 %314 }
 0x3cb   :  { %v316_v13 = vrot.slane %v315_v12, 4 }
 0x3cd   :  { %v317_v14 = vadd.f32 %v316_v13, %v315_v12 }
 0x3cf   :  { %v318_v15 = vrot.slane %v317_v14, 2 }
 0x3d1   :  { %v319_v16 = vadd.f32 %v318_v15, %v317_v14 }
 0x3d3   :  { %v320_v17 = vrot.slane %v319_v16, 1 }
 0x3d5   :  { %v321_v18 = vadd.f32 %v320_v17, %v319_v16 }
 0x3d7   :  { %590 = vpush %v321_v18 }
 0x3ea   :  { %v428_v19 = vpop.xlane.xlu0 %427 }
 0x3eb   :  { %v429_v20 = vrot.slane %v428_v19, 4 }
 0x3ed   :  { %v430_v21 = vadd.f32 %v429_v20, %v428_v19 }
 0x3ef   :  { %v431_v22 = vrot.slane %v430_v21, 2 }
 0x3f1   :  { %v432_v23 = vadd.f32 %v431_v22, %v430_v21 }
 0x3f3   :  { %v433_v24 = vrot.slane %v432_v23, 1 }
 0x3f5   :  { %v434_v25 = vadd.f32 %v433_v24, %v432_v23 }
 0x3f7   :  { %592 = vpush %v434_v25 }
 0x408   :  { %s591_s2 = spop %590 }
 0x428   :  { %s593_s3 = spop %592 }
 0x429   :  { %s436_s7 = sadd.f32 %s593_s3, %s591_s2 }
 0x42b   :  { %s437_s18 = smul.f32 0.125, %s436_s7 }
 0x42d   :  { %v438_v26 = vstv %s437_s18 }
 0x42e   :  { %439 = vst [vmem:[#allocation7] sm:$0x1] %v438_v26 }
 0x42f   :  { %687 = shalt.err (!%p684_p6)
}
 0x430   :  { %s688_s23 = scalar_lea.hbm %s871_s8, 16 }
 0x431   :  { %p689_p7 = scmp.ne.s32.totalorder %s871_s8, %s688_s23  ;;  %p692_p8 = scmp.lt.u32.totalorder %s688_s23, %s871_s8 }
 0x433   :  { %p694_p9 = pnand %p692_p8, %p689_p7 }
 0x435   :  { %697 = shalt.err (!%p694_p9)
}
 0x436   :  { %449 = dma.vmem_to_hbm [thread:$0]  %s447_s17, 16, %s871_s8, [#allocation4]  }
 0x437   :  { %702 = dma.done.wait [#allocation4], 16  }
 0x438   :  { %703 = vsyncadd [#allocation4], 4294967280 }
 0x439   :  { %453 = vsyncpa [#allocation3], 1 }
 0x43a   :  { %454 = vsyncpa [#allocation6], 1 }
 0x43b   :  { %455 = vsyncpa [#allocation4], 1 }

</bundles_post_ra>
